<compile_context>
chip_gen: v6e
topology: v6e:2x2x1
jax: 0.10.0
libtpu: 0.0.40
codegen_flags: <defaults>
</compile_context>

<pallas_src>
import functools

import jax
import jax.numpy as jnp
from jax.experimental import pallas as pl
from jax.experimental.pallas import tpu as pltpu


def _round_up(x, m):
    return ((x + m - 1) // m) * m


# ----------------------------------------------------------------------------
# Kernel: one batch tile per grid step; all P orientation proposals in-body.
# ----------------------------------------------------------------------------
def _affordance_kernel(pf_ref, xt_ref, orient_ref,
                       w1f_ref, w1xt_ref, w1o_ref, b1_ref, w2_ref, b2_ref,
                       aff_ref, unc_ref, *, sigmoid_output):
    n_props = aff_ref.shape[-1]
    odim = w1o_ref.shape[0]

    # Shared per-row mlp1 partial: bf16 MXU matmul (f32 accumulation) for the
    # dominant pixel-feature term + VPU broadcast-FMAs for the tiny xyz/task
    # columns.  Computed once per tile, reused by every proposal.
    base = jnp.dot(pf_ref[...].astype(jnp.bfloat16), w1f_ref[...],
                   preferred_element_type=jnp.float32)              # (TB, H)
    xt = xt_ref[...]                                                 # (TB, 4)
    w1xt = w1xt_ref[...]                                             # (4, H)
    for d in range(xt.shape[-1]):
        base = base + xt[:, d:d + 1] * w1xt[d:d + 1, :]
    base = base + b1_ref[...]

    orient = orient_ref[...]                                         # (TB, P*odim)
    w1o = w1o_ref[...]                                               # (odim, H)
    w2 = w2_ref[...]                                                 # (H, 2) bf16
    b2 = b2_ref[...]                                                 # (1, 2)

    aff_cols, unc_cols = [], []
    for p in range(n_props):                                         # static unroll
        h = base
        for d in range(odim):                                        # K=4 -> VPU FMAs
            c = p * odim + d
            h = h + orient[:, c:c + 1] * w1o[d:d + 1, :]
        h = jnp.maximum(h, 0.01 * h)                                 # leaky_relu
        o = jnp.dot(h.astype(jnp.bfloat16), w2,
                    preferred_element_type=jnp.float32) + b2         # (TB, 2)
        aff_cols.append(o[:, 0:1])
        unc_cols.append(o[:, 1:2])

    aff = jnp.concatenate(aff_cols, axis=-1)                         # (TB, P)
    unc = jnp.concatenate(unc_cols, axis=-1)                         # (TB, P)
    if sigmoid_output:
        aff = jax.nn.sigmoid(aff)                                    # affordance lanes only
    aff_ref[...] = aff.astype(aff_ref.dtype)
    unc_ref[...] = jnp.square(unc).astype(unc_ref.dtype)             # uncertainty lanes only


# ----------------------------------------------------------------------------
# Tiling / VMEM budgeting
# ----------------------------------------------------------------------------
def _pick_tile_b(B, feat, P, odim, hidden):
    # VMEM bytes per batch row: double-buffered streamed blocks (f32 in the
    # pipeline; cast to bf16 happens in-kernel) plus the row-local working set.
    per_row = (2 * 4 * (feat + 4 + P * odim)     # double-buffered input blocks
               + 2 * 4 * 2 * P                   # double-buffered output slabs
               + 4 * 4 * hidden)                 # base / h / temporaries (f32)
    budget = 16 * 1024 * 1024                    # streaming budget, safe on v7x (64 MiB)
    tb = max(8, min(512, (budget // max(per_row, 1)) // 8 * 8))
    # v7x megacore: keep at least 2 batch tiles on the "parallel" axis if the
    # batch is big enough; otherwise a single tile is unavoidable.
    if B >= 16:
        while tb > 8 and pl.cdiv(B, tb) < 2:
            tb = max(8, (tb // 2) // 8 * 8)
    return int(min(tb, _round_up(B, 8)))


def _vmem_limit_bytes(tile_b, feat, P, odim, hidden):
    streamed = 2 * 4 * tile_b * (feat + 4 + P * odim) + 2 * 4 * 2 * tile_b * P
    weights = 2 * (feat * hidden * 2 + (4 + odim) * hidden * 4
                   + hidden * 4 + hidden * 2 * 2 + 2 * 4)
    working = 4 * 4 * tile_b * hidden
    est = streamed + weights + working
    # >= default scoped limits on every generation, <= v7x physical VMEM.
    return int(min(48 * 1024 * 1024, max(16 * 1024 * 1024, 2 * est)))


# ----------------------------------------------------------------------------
# Host wrapper
# ----------------------------------------------------------------------------
def _affordance_forward(pixel_feats, xyzs, orientations, tasks,
                        w1f_bf16, w1xt, w1o, b1, w2_bf16, b2,
                        *, sigmoid_output):
    B, feat = pixel_feats.shape
    P, odim = orientations.shape[1], orientations.shape[2]
    hidden = w1f_bf16.shape[1]

    # Merge the tiny per-row inputs (one (B,4) slab, one (4,H) weight) and
    # flatten orientations (free reshape; no transpose, no host-side pad).
    xt = jnp.concatenate([xyzs, tasks], axis=-1).astype(jnp.float32)        # (B, 4)
    orient_flat = jnp.reshape(orientations, (B, P * odim)).astype(jnp.float32)

    tile_b = _pick_tile_b(B, feat, P, odim, hidden)
    grid = (pl.cdiv(B, tile_b),)

    def resident(a):
        # Constant-index (un-tiled) weight / bias blocks.
        return pl.BlockSpec(a.shape, lambda i, _nd=a.ndim: (0,) * _nd)

    flops = int(2 * B * feat * hidden            # pixel_feats @ W1_f
                + 2 * B * 4 * hidden             # xyz + task broadcast FMAs
                + 2 * B * P * odim * hidden      # orientation broadcast FMAs
                + 2 * B * P * hidden * 2)        # mlp2
    transcendentals = int(B * P) if sigmoid_output else 0
    bytes_accessed = int(4 * (B * (feat + 4 + P * odim) + 2 * B * P
                              + w1xt.size + w1o.size + b1.size + b2.size)
                         + 2 * (w1f_bf16.size + w2_bf16.size))

    kernel = functools.partial(_affordance_kernel, sigmoid_output=sigmoid_output)
    out_spec = pl.BlockSpec((tile_b, P), lambda i: (i, 0))

    aff, unc = pl.pallas_call(
        kernel,
        out_shape=(jax.ShapeDtypeStruct((B, P), jnp.float32),
                   jax.ShapeDtypeStruct((B, P), jnp.float32)),
        grid=grid,
        in_specs=[
            pl.BlockSpec((tile_b, feat), lambda i: (i, 0)),        # pixel_feats
            pl.BlockSpec((tile_b, 4), lambda i: (i, 0)),           # [xyz, task]
            pl.BlockSpec((tile_b, P * odim), lambda i: (i, 0)),    # orientations (flat)
            resident(w1f_bf16), resident(w1xt), resident(w1o),
            resident(b1), resident(w2_bf16), resident(b2),
        ],
        out_specs=(out_spec, out_spec),
        compiler_params=pltpu.CompilerParams(
            dimension_semantics=("parallel",),
            vmem_limit_bytes=_vmem_limit_bytes(tile_b, feat, P, odim, hidden)),
        cost_estimate=pl.CostEstimate(flops=flops,
                                      transcendentals=transcendentals,
                                      bytes_accessed=bytes_accessed),
    )(pixel_feats, xt, orient_flat, w1f_bf16, w1xt, w1o, b1, w2_bf16, b2)

    return jnp.reshape(aff, (B, P, 1)), jnp.reshape(unc, (B, P, 1))


# ----------------------------------------------------------------------------
# Module-equivalent wrapper
# ----------------------------------------------------------------------------
class AffordanceNetPallas:
    XYZ_DIM = 3
    TASK_DIM = 1

    def __init__(self, point_feature_dimension, orientation_dimension=4,
                 sigmoid_output=False, key=None):
        if key is None:
            key = jax.random.PRNGKey(0)
        self.point_feature_dimension = point_feature_dimension
        self.orientation_dimension = orientation_dimension
        self.sigmoid_output = sigmoid_output
        input_dim = (point_feature_dimension + orientation_dimension
                     + self.XYZ_DIM + self.TASK_DIM)
        k1, k2, k3, k4 = jax.random.split(key, 4)
        lim1 = 1.0 / float(input_dim) ** 0.5
        lim2 = 1.0 / float(point_feature_dimension) ** 0.5
        # Stored transposed relative to PyTorch (in, out) so forward is x @ W.
        self.w1 = jax.random.uniform(k1, (input_dim, point_feature_dimension),
                                     jnp.float32, -lim1, lim1)
        self.b1 = jax.random.uniform(k2, (1, point_feature_dimension),
                                     jnp.float32, -lim1, lim1)
        self.w2 = jax.random.uniform(k3, (point_feature_dimension, 2),
                                     jnp.float32, -lim2, lim2)
        self.b2 = jax.random.uniform(k4, (1, 2), jnp.float32, -lim2, lim2)
        # Row-slices of W1 matching the concat order [pixel_feats, xyzs, orients, tasks].
        f, o = point_feature_dimension, orientation_dimension
        self.w1_f = self.w1[:f].astype(jnp.bfloat16)                 # bf16 MXU weight
        w1_x = self.w1[f:f + self.XYZ_DIM]
        self.w1_o = self.w1[f + self.XYZ_DIM:f + self.XYZ_DIM + o]
        w1_t = self.w1[f + self.XYZ_DIM + o:]
        self.w1_xt = jnp.concatenate([w1_x, w1_t], axis=0)           # (4, H), [x,y,z,task]
        self.w2_bf16 = self.w2.astype(jnp.bfloat16)                  # bf16 MXU weight

    def __call__(self, pixel_feats, xyzs, orientations, tasks):
        return _affordance_forward(
            pixel_feats, xyzs, orientations, tasks,
            self.w1_f, self.w1_xt, self.w1_o, self.b1, self.w2_bf16, self.b2,
            sigmoid_output=self.sigmoid_output)


# ----------------------------------------------------------------------------
# Pure-JAX reference (original repeat/concat formulation, f32) for sanity check
# ----------------------------------------------------------------------------
def _reference(net, pixel_feats, xyzs, orientations, tasks):
    P = orientations.shape[1]
    flat_orients = jnp.reshape(orientations, (-1, net.orientation_dimension))
    x = jnp.concatenate([
        jnp.repeat(pixel_feats, P, axis=0),
        jnp.repeat(xyzs, P, axis=0),
        flat_orients,
        jnp.repeat(tasks, P, axis=0)], axis=-1)
    h = x @ net.w1 + net.b1
    h = jnp.where(h >= 0, h, 0.01 * h)
    o = h @ net.w2 + net.b2
    aff = o[:, 0]
    if net.sigmoid_output:
        aff = jax.nn.sigmoid(aff)
    unc = jnp.square(o[:, 1])
    return (jnp.reshape(aff, (-1, P, 1)), jnp.reshape(unc, (-1, P, 1)))


if __name__ == "__main__":
    FEAT = 32
    key = jax.random.PRNGKey(0)

    # (B, P, sigmoid): small case, small case w/ sigmoid, multi-tile ragged case.
    configs = [(2, 4, False), (2, 4, True), (20, 4, True)]
    for B, P, sig in configs:
        kf, kx, ko, kt, kp = jax.random.split(jax.random.fold_in(key, B + P), 5)
        pixel_feats = jax.random.normal(kf, (B, FEAT), jnp.float32)
        xyzs = jax.random.normal(kx, (B, 3), jnp.float32)
        orientations = jax.random.normal(ko, (B, P, 4), jnp.float32)
        tasks = jax.random.normal(kt, (B, 1), jnp.float32)

        net = AffordanceNetPallas(point_feature_dimension=FEAT,
                                  orientation_dimension=4,
                                  sigmoid_output=sig, key=kp)
        aff, unc = net(pixel_feats, xyzs, orientations, tasks)
        aff = jax.block_until_ready(aff)
        unc = jax.block_until_ready(unc)

        ref_aff, ref_unc = _reference(net, pixel_feats, xyzs, orientations, tasks)
        assert aff.shape == (B, P, 1) and unc.shape == (B, P, 1)
        # Tolerance reflects the intentional bf16 MXU path (f32 accumulation);
        # the f32 reference differs by ~1e-3 absolute in practice.
        assert jnp.allclose(aff, ref_aff, atol=2e-2, rtol=2e-2)
        assert jnp.allclose(unc, ref_unc, atol=2e-2, rtol=2e-2)

    print("KERNEL_OK")
</pallas_src>

<mosaic_0001>
module attributes {stable_mosaic.version = 11 : i64} {
  func.func @_affordance_kernel(%arg0: i32, %arg1: memref<8x32xf32, #tpu.memory_space<vmem>>, %arg2: memref<8x4xf32, #tpu.memory_space<vmem>>, %arg3: memref<8x16xf32, #tpu.memory_space<vmem>>, %arg4: memref<32x32xbf16, #tpu.memory_space<vmem>>, %arg5: memref<4x32xf32, #tpu.memory_space<vmem>>, %arg6: memref<4x32xf32, #tpu.memory_space<vmem>>, %arg7: memref<1x32xf32, #tpu.memory_space<vmem>>, %arg8: memref<32x2xbf16, #tpu.memory_space<vmem>>, %arg9: memref<1x2xf32, #tpu.memory_space<vmem>>, %arg10: memref<8x4xf32, #tpu.memory_space<vmem>>, %arg11: memref<8x4xf32, #tpu.memory_space<vmem>>) attributes {dimension_semantics = [#tpu.dimension_semantics<parallel>], iteration_bounds = array<i64: 1>, scalar_prefetch = 0 : i64, scratch_operands = 0 : i64, tpu.core_type = #tpu.core_type<tc>, window_params = [{transform_indices = @transform_0, window_bounds = array<i64: 8, 32>}, {transform_indices = @transform_1, window_bounds = array<i64: 8, 4>}, {transform_indices = @transform_2, window_bounds = array<i64: 8, 16>}, {pipeline_mode = #tpu.pipeline_mode<synchronous>, transform_indices = @transform_3, window_bounds = array<i64: 32, 32>}, {pipeline_mode = #tpu.pipeline_mode<synchronous>, transform_indices = @transform_4, window_bounds = array<i64: 4, 32>}, {pipeline_mode = #tpu.pipeline_mode<synchronous>, transform_indices = @transform_5, window_bounds = array<i64: 4, 32>}, {pipeline_mode = #tpu.pipeline_mode<synchronous>, transform_indices = @transform_6, window_bounds = array<i64: 1, 32>}, {pipeline_mode = #tpu.pipeline_mode<synchronous>, transform_indices = @transform_7, window_bounds = array<i64: 32, 2>}, {pipeline_mode = #tpu.pipeline_mode<synchronous>, transform_indices = @transform_8, window_bounds = array<i64: 1, 2>}, {transform_indices = @transform_9, window_bounds = array<i64: 8, 4>}, {transform_indices = @transform_10, window_bounds = array<i64: 8, 4>}]} {
    %c0 = arith.constant 0 : index
    %c0_0 = arith.constant 0 : index
    %0 = vector.load %arg1[%c0, %c0_0] : memref<8x32xf32, #tpu.memory_space<vmem>>, vector<8x32xf32>
    %1 = arith.truncf %0 : vector<8x32xf32> to vector<8x32xbf16>
    %c0_1 = arith.constant 0 : index
    %c0_2 = arith.constant 0 : index
    %2 = vector.load %arg4[%c0_1, %c0_2] : memref<32x32xbf16, #tpu.memory_space<vmem>>, vector<32x32xbf16>
    %cst = arith.constant dense<0.000000e+00> : vector<8x32xf32>
    %3 = tpu.matmul %1, %2, %cst {dimension_numbers = #tpu.dot_dimension_numbers<[1], [0], [0], [1], [0, 0, 1, 1], [], []>} : vector<8x32xbf16>, vector<32x32xbf16>, vector<8x32xf32> -> vector<8x32xf32>
    %c0_3 = arith.constant 0 : index
    %c0_4 = arith.constant 0 : index
    %4 = vector.load %arg2[%c0_3, %c0_4] : memref<8x4xf32, #tpu.memory_space<vmem>>, vector<8x4xf32>
    %c0_5 = arith.constant 0 : index
    %c0_6 = arith.constant 0 : index
    %5 = vector.load %arg5[%c0_5, %c0_6] : memref<4x32xf32, #tpu.memory_space<vmem>>, vector<4x32xf32>
    %6 = vector.extract_strided_slice %4 {offsets = [0, 0], sizes = [8, 1], strides = [1, 1]} : vector<8x4xf32> to vector<8x1xf32>
    %7 = vector.extract_strided_slice %5 {offsets = [0, 0], sizes = [1, 32], strides = [1, 1]} : vector<4x32xf32> to vector<1x32xf32>
    %8 = vector.broadcast %6 : vector<8x1xf32> to vector<8x32xf32>
    %9 = vector.broadcast %7 : vector<1x32xf32> to vector<8x32xf32>
    %10 = arith.mulf %8, %9 : vector<8x32xf32>
    %11 = arith.addf %3, %10 : vector<8x32xf32>
    %12 = vector.extract_strided_slice %4 {offsets = [0, 1], sizes = [8, 1], strides = [1, 1]} : vector<8x4xf32> to vector<8x1xf32>
    %13 = vector.extract_strided_slice %5 {offsets = [1, 0], sizes = [1, 32], strides = [1, 1]} : vector<4x32xf32> to vector<1x32xf32>
    %14 = vector.broadcast %12 : vector<8x1xf32> to vector<8x32xf32>
    %15 = vector.broadcast %13 : vector<1x32xf32> to vector<8x32xf32>
    %16 = arith.mulf %14, %15 : vector<8x32xf32>
    %17 = arith.addf %11, %16 : vector<8x32xf32>
    %18 = vector.extract_strided_slice %4 {offsets = [0, 2], sizes = [8, 1], strides = [1, 1]} : vector<8x4xf32> to vector<8x1xf32>
    %19 = vector.extract_strided_slice %5 {offsets = [2, 0], sizes = [1, 32], strides = [1, 1]} : vector<4x32xf32> to vector<1x32xf32>
    %20 = vector.broadcast %18 : vector<8x1xf32> to vector<8x32xf32>
    %21 = vector.broadcast %19 : vector<1x32xf32> to vector<8x32xf32>
    %22 = arith.mulf %20, %21 : vector<8x32xf32>
    %23 = arith.addf %17, %22 : vector<8x32xf32>
    %24 = vector.extract_strided_slice %4 {offsets = [0, 3], sizes = [8, 1], strides = [1, 1]} : vector<8x4xf32> to vector<8x1xf32>
    %25 = vector.extract_strided_slice %5 {offsets = [3, 0], sizes = [1, 32], strides = [1, 1]} : vector<4x32xf32> to vector<1x32xf32>
    %26 = vector.broadcast %24 : vector<8x1xf32> to vector<8x32xf32>
    %27 = vector.broadcast %25 : vector<1x32xf32> to vector<8x32xf32>
    %28 = arith.mulf %26, %27 : vector<8x32xf32>
    %29 = arith.addf %23, %28 : vector<8x32xf32>
    %c0_7 = arith.constant 0 : index
    %c0_8 = arith.constant 0 : index
    %30 = vector.load %arg7[%c0_7, %c0_8] : memref<1x32xf32, #tpu.memory_space<vmem>>, vector<1x32xf32>
    %31 = vector.broadcast %30 : vector<1x32xf32> to vector<8x32xf32>
    %32 = arith.addf %29, %31 : vector<8x32xf32>
    %c0_9 = arith.constant 0 : index
    %c0_10 = arith.constant 0 : index
    %33 = vector.load %arg3[%c0_9, %c0_10] : memref<8x16xf32, #tpu.memory_space<vmem>>, vector<8x16xf32>
    %c0_11 = arith.constant 0 : index
    %c0_12 = arith.constant 0 : index
    %34 = vector.load %arg6[%c0_11, %c0_12] : memref<4x32xf32, #tpu.memory_space<vmem>>, vector<4x32xf32>
    %c0_13 = arith.constant 0 : index
    %c0_14 = arith.constant 0 : index
    %35 = vector.load %arg8[%c0_13, %c0_14] : memref<32x2xbf16, #tpu.memory_space<vmem>>, vector<32x2xbf16>
    %c0_15 = arith.constant 0 : index
    %c0_16 = arith.constant 0 : index
    %36 = vector.load %arg9[%c0_15, %c0_16] : memref<1x2xf32, #tpu.memory_space<vmem>>, vector<1x2xf32>
    %37 = vector.extract_strided_slice %33 {offsets = [0, 0], sizes = [8, 1], strides = [1, 1]} : vector<8x16xf32> to vector<8x1xf32>
    %38 = vector.extract_strided_slice %34 {offsets = [0, 0], sizes = [1, 32], strides = [1, 1]} : vector<4x32xf32> to vector<1x32xf32>
    %39 = vector.broadcast %37 : vector<8x1xf32> to vector<8x32xf32>
    %40 = vector.broadcast %38 : vector<1x32xf32> to vector<8x32xf32>
    %41 = arith.mulf %39, %40 : vector<8x32xf32>
    %42 = arith.addf %32, %41 : vector<8x32xf32>
    %43 = vector.extract_strided_slice %33 {offsets = [0, 1], sizes = [8, 1], strides = [1, 1]} : vector<8x16xf32> to vector<8x1xf32>
    %44 = vector.extract_strided_slice %34 {offsets = [1, 0], sizes = [1, 32], strides = [1, 1]} : vector<4x32xf32> to vector<1x32xf32>
    %45 = vector.broadcast %43 : vector<8x1xf32> to vector<8x32xf32>
    %46 = vector.broadcast %44 : vector<1x32xf32> to vector<8x32xf32>
    %47 = arith.mulf %45, %46 : vector<8x32xf32>
    %48 = arith.addf %42, %47 : vector<8x32xf32>
    %49 = vector.extract_strided_slice %33 {offsets = [0, 2], sizes = [8, 1], strides = [1, 1]} : vector<8x16xf32> to vector<8x1xf32>
    %50 = vector.extract_strided_slice %34 {offsets = [2, 0], sizes = [1, 32], strides = [1, 1]} : vector<4x32xf32> to vector<1x32xf32>
    %51 = vector.broadcast %49 : vector<8x1xf32> to vector<8x32xf32>
    %52 = vector.broadcast %50 : vector<1x32xf32> to vector<8x32xf32>
    %53 = arith.mulf %51, %52 : vector<8x32xf32>
    %54 = arith.addf %48, %53 : vector<8x32xf32>
    %55 = vector.extract_strided_slice %33 {offsets = [0, 3], sizes = [8, 1], strides = [1, 1]} : vector<8x16xf32> to vector<8x1xf32>
    %56 = vector.extract_strided_slice %34 {offsets = [3, 0], sizes = [1, 32], strides = [1, 1]} : vector<4x32xf32> to vector<1x32xf32>
    %57 = vector.broadcast %55 : vector<8x1xf32> to vector<8x32xf32>
    %58 = vector.broadcast %56 : vector<1x32xf32> to vector<8x32xf32>
    %59 = arith.mulf %57, %58 : vector<8x32xf32>
    %60 = arith.addf %54, %59 : vector<8x32xf32>
    %cst_17 = arith.constant 0.00999999977 : f32
    %61 = vector.broadcast %cst_17 : f32 to vector<8x32xf32>
    %62 = arith.mulf %61, %60 : vector<8x32xf32>
    %63 = arith.maximumf %60, %62 : vector<8x32xf32>
    %64 = arith.truncf %63 : vector<8x32xf32> to vector<8x32xbf16>
    %cst_18 = arith.constant dense<0.000000e+00> : vector<8x2xf32>
    %65 = tpu.matmul %64, %35, %cst_18 {dimension_numbers = #tpu.dot_dimension_numbers<[1], [0], [0], [1], [0, 0, 1, 1], [], []>} : vector<8x32xbf16>, vector<32x2xbf16>, vector<8x2xf32> -> vector<8x2xf32>
    %66 = vector.broadcast %36 : vector<1x2xf32> to vector<8x2xf32>
    %67 = arith.addf %65, %66 : vector<8x2xf32>
    %68 = vector.extract_strided_slice %67 {offsets = [0, 0], sizes = [8, 1], strides = [1, 1]} : vector<8x2xf32> to vector<8x1xf32>
    %69 = vector.extract_strided_slice %67 {offsets = [0, 1], sizes = [8, 1], strides = [1, 1]} : vector<8x2xf32> to vector<8x1xf32>
    %70 = vector.extract_strided_slice %33 {offsets = [0, 4], sizes = [8, 1], strides = [1, 1]} : vector<8x16xf32> to vector<8x1xf32>
    %71 = vector.extract_strided_slice %34 {offsets = [0, 0], sizes = [1, 32], strides = [1, 1]} : vector<4x32xf32> to vector<1x32xf32>
    %72 = vector.broadcast %70 : vector<8x1xf32> to vector<8x32xf32>
    %73 = vector.broadcast %71 : vector<1x32xf32> to vector<8x32xf32>
    %74 = arith.mulf %72, %73 : vector<8x32xf32>
    %75 = arith.addf %32, %74 : vector<8x32xf32>
    %76 = vector.extract_strided_slice %33 {offsets = [0, 5], sizes = [8, 1], strides = [1, 1]} : vector<8x16xf32> to vector<8x1xf32>
    %77 = vector.extract_strided_slice %34 {offsets = [1, 0], sizes = [1, 32], strides = [1, 1]} : vector<4x32xf32> to vector<1x32xf32>
    %78 = vector.broadcast %76 : vector<8x1xf32> to vector<8x32xf32>
    %79 = vector.broadcast %77 : vector<1x32xf32> to vector<8x32xf32>
    %80 = arith.mulf %78, %79 : vector<8x32xf32>
    %81 = arith.addf %75, %80 : vector<8x32xf32>
    %82 = vector.extract_strided_slice %33 {offsets = [0, 6], sizes = [8, 1], strides = [1, 1]} : vector<8x16xf32> to vector<8x1xf32>
    %83 = vector.extract_strided_slice %34 {offsets = [2, 0], sizes = [1, 32], strides = [1, 1]} : vector<4x32xf32> to vector<1x32xf32>
    %84 = vector.broadcast %82 : vector<8x1xf32> to vector<8x32xf32>
    %85 = vector.broadcast %83 : vector<1x32xf32> to vector<8x32xf32>
    %86 = arith.mulf %84, %85 : vector<8x32xf32>
    %87 = arith.addf %81, %86 : vector<8x32xf32>
    %88 = vector.extract_strided_slice %33 {offsets = [0, 7], sizes = [8, 1], strides = [1, 1]} : vector<8x16xf32> to vector<8x1xf32>
    %89 = vector.extract_strided_slice %34 {offsets = [3, 0], sizes = [1, 32], strides = [1, 1]} : vector<4x32xf32> to vector<1x32xf32>
    %90 = vector.broadcast %88 : vector<8x1xf32> to vector<8x32xf32>
    %91 = vector.broadcast %89 : vector<1x32xf32> to vector<8x32xf32>
    %92 = arith.mulf %90, %91 : vector<8x32xf32>
    %93 = arith.addf %87, %92 : vector<8x32xf32>
    %cst_19 = arith.constant 0.00999999977 : f32
    %94 = vector.broadcast %cst_19 : f32 to vector<8x32xf32>
    %95 = arith.mulf %94, %93 : vector<8x32xf32>
    %96 = arith.maximumf %93, %95 : vector<8x32xf32>
    %97 = arith.truncf %96 : vector<8x32xf32> to vector<8x32xbf16>
    %cst_20 = arith.constant dense<0.000000e+00> : vector<8x2xf32>
    %98 = tpu.matmul %97, %35, %cst_20 {dimension_numbers = #tpu.dot_dimension_numbers<[1], [0], [0], [1], [0, 0, 1, 1], [], []>} : vector<8x32xbf16>, vector<32x2xbf16>, vector<8x2xf32> -> vector<8x2xf32>
    %99 = vector.broadcast %36 : vector<1x2xf32> to vector<8x2xf32>
    %100 = arith.addf %98, %99 : vector<8x2xf32>
    %101 = vector.extract_strided_slice %100 {offsets = [0, 0], sizes = [8, 1], strides = [1, 1]} : vector<8x2xf32> to vector<8x1xf32>
    %102 = vector.extract_strided_slice %100 {offsets = [0, 1], sizes = [8, 1], strides = [1, 1]} : vector<8x2xf32> to vector<8x1xf32>
    %103 = vector.extract_strided_slice %33 {offsets = [0, 8], sizes = [8, 1], strides = [1, 1]} : vector<8x16xf32> to vector<8x1xf32>
    %104 = vector.extract_strided_slice %34 {offsets = [0, 0], sizes = [1, 32], strides = [1, 1]} : vector<4x32xf32> to vector<1x32xf32>
    %105 = vector.broadcast %103 : vector<8x1xf32> to vector<8x32xf32>
    %106 = vector.broadcast %104 : vector<1x32xf32> to vector<8x32xf32>
    %107 = arith.mulf %105, %106 : vector<8x32xf32>
    %108 = arith.addf %32, %107 : vector<8x32xf32>
    %109 = vector.extract_strided_slice %33 {offsets = [0, 9], sizes = [8, 1], strides = [1, 1]} : vector<8x16xf32> to vector<8x1xf32>
    %110 = vector.extract_strided_slice %34 {offsets = [1, 0], sizes = [1, 32], strides = [1, 1]} : vector<4x32xf32> to vector<1x32xf32>
    %111 = vector.broadcast %109 : vector<8x1xf32> to vector<8x32xf32>
    %112 = vector.broadcast %110 : vector<1x32xf32> to vector<8x32xf32>
    %113 = arith.mulf %111, %112 : vector<8x32xf32>
    %114 = arith.addf %108, %113 : vector<8x32xf32>
    %115 = vector.extract_strided_slice %33 {offsets = [0, 10], sizes = [8, 1], strides = [1, 1]} : vector<8x16xf32> to vector<8x1xf32>
    %116 = vector.extract_strided_slice %34 {offsets = [2, 0], sizes = [1, 32], strides = [1, 1]} : vector<4x32xf32> to vector<1x32xf32>
    %117 = vector.broadcast %115 : vector<8x1xf32> to vector<8x32xf32>
    %118 = vector.broadcast %116 : vector<1x32xf32> to vector<8x32xf32>
    %119 = arith.mulf %117, %118 : vector<8x32xf32>
    %120 = arith.addf %114, %119 : vector<8x32xf32>
    %121 = vector.extract_strided_slice %33 {offsets = [0, 11], sizes = [8, 1], strides = [1, 1]} : vector<8x16xf32> to vector<8x1xf32>
    %122 = vector.extract_strided_slice %34 {offsets = [3, 0], sizes = [1, 32], strides = [1, 1]} : vector<4x32xf32> to vector<1x32xf32>
    %123 = vector.broadcast %121 : vector<8x1xf32> to vector<8x32xf32>
    %124 = vector.broadcast %122 : vector<1x32xf32> to vector<8x32xf32>
    %125 = arith.mulf %123, %124 : vector<8x32xf32>
    %126 = arith.addf %120, %125 : vector<8x32xf32>
    %cst_21 = arith.constant 0.00999999977 : f32
    %127 = vector.broadcast %cst_21 : f32 to vector<8x32xf32>
    %128 = arith.mulf %127, %126 : vector<8x32xf32>
    %129 = arith.maximumf %126, %128 : vector<8x32xf32>
    %130 = arith.truncf %129 : vector<8x32xf32> to vector<8x32xbf16>
    %cst_22 = arith.constant dense<0.000000e+00> : vector<8x2xf32>
    %131 = tpu.matmul %130, %35, %cst_22 {dimension_numbers = #tpu.dot_dimension_numbers<[1], [0], [0], [1], [0, 0, 1, 1], [], []>} : vector<8x32xbf16>, vector<32x2xbf16>, vector<8x2xf32> -> vector<8x2xf32>
    %132 = vector.broadcast %36 : vector<1x2xf32> to vector<8x2xf32>
    %133 = arith.addf %131, %132 : vector<8x2xf32>
    %134 = vector.extract_strided_slice %133 {offsets = [0, 0], sizes = [8, 1], strides = [1, 1]} : vector<8x2xf32> to vector<8x1xf32>
    %135 = vector.extract_strided_slice %133 {offsets = [0, 1], sizes = [8, 1], strides = [1, 1]} : vector<8x2xf32> to vector<8x1xf32>
    %136 = vector.extract_strided_slice %33 {offsets = [0, 12], sizes = [8, 1], strides = [1, 1]} : vector<8x16xf32> to vector<8x1xf32>
    %137 = vector.extract_strided_slice %34 {offsets = [0, 0], sizes = [1, 32], strides = [1, 1]} : vector<4x32xf32> to vector<1x32xf32>
    %138 = vector.broadcast %136 : vector<8x1xf32> to vector<8x32xf32>
    %139 = vector.broadcast %137 : vector<1x32xf32> to vector<8x32xf32>
    %140 = arith.mulf %138, %139 : vector<8x32xf32>
    %141 = arith.addf %32, %140 : vector<8x32xf32>
    %142 = vector.extract_strided_slice %33 {offsets = [0, 13], sizes = [8, 1], strides = [1, 1]} : vector<8x16xf32> to vector<8x1xf32>
    %143 = vector.extract_strided_slice %34 {offsets = [1, 0], sizes = [1, 32], strides = [1, 1]} : vector<4x32xf32> to vector<1x32xf32>
    %144 = vector.broadcast %142 : vector<8x1xf32> to vector<8x32xf32>
    %145 = vector.broadcast %143 : vector<1x32xf32> to vector<8x32xf32>
    %146 = arith.mulf %144, %145 : vector<8x32xf32>
    %147 = arith.addf %141, %146 : vector<8x32xf32>
    %148 = vector.extract_strided_slice %33 {offsets = [0, 14], sizes = [8, 1], strides = [1, 1]} : vector<8x16xf32> to vector<8x1xf32>
    %149 = vector.extract_strided_slice %34 {offsets = [2, 0], sizes = [1, 32], strides = [1, 1]} : vector<4x32xf32> to vector<1x32xf32>
    %150 = vector.broadcast %148 : vector<8x1xf32> to vector<8x32xf32>
    %151 = vector.broadcast %149 : vector<1x32xf32> to vector<8x32xf32>
    %152 = arith.mulf %150, %151 : vector<8x32xf32>
    %153 = arith.addf %147, %152 : vector<8x32xf32>
    %154 = vector.extract_strided_slice %33 {offsets = [0, 15], sizes = [8, 1], strides = [1, 1]} : vector<8x16xf32> to vector<8x1xf32>
    %155 = vector.extract_strided_slice %34 {offsets = [3, 0], sizes = [1, 32], strides = [1, 1]} : vector<4x32xf32> to vector<1x32xf32>
    %156 = vector.broadcast %154 : vector<8x1xf32> to vector<8x32xf32>
    %157 = vector.broadcast %155 : vector<1x32xf32> to vector<8x32xf32>
    %158 = arith.mulf %156, %157 : vector<8x32xf32>
    %159 = arith.addf %153, %158 : vector<8x32xf32>
    %cst_23 = arith.constant 0.00999999977 : f32
    %160 = vector.broadcast %cst_23 : f32 to vector<8x32xf32>
    %161 = arith.mulf %160, %159 : vector<8x32xf32>
    %162 = arith.maximumf %159, %161 : vector<8x32xf32>
    %163 = arith.truncf %162 : vector<8x32xf32> to vector<8x32xbf16>
    %cst_24 = arith.constant dense<0.000000e+00> : vector<8x2xf32>
    %164 = tpu.matmul %163, %35, %cst_24 {dimension_numbers = #tpu.dot_dimension_numbers<[1], [0], [0], [1], [0, 0, 1, 1], [], []>} : vector<8x32xbf16>, vector<32x2xbf16>, vector<8x2xf32> -> vector<8x2xf32>
    %165 = vector.broadcast %36 : vector<1x2xf32> to vector<8x2xf32>
    %166 = arith.addf %164, %165 : vector<8x2xf32>
    %167 = vector.extract_strided_slice %166 {offsets = [0, 0], sizes = [8, 1], strides = [1, 1]} : vector<8x2xf32> to vector<8x1xf32>
    %168 = vector.extract_strided_slice %166 {offsets = [0, 1], sizes = [8, 1], strides = [1, 1]} : vector<8x2xf32> to vector<8x1xf32>
    %169 = tpu.concatenate %68, %101, %134, %167 in 1 : vector<8x1xf32>, vector<8x1xf32>, vector<8x1xf32>, vector<8x1xf32> -> vector<8x4xf32>
    %170 = tpu.concatenate %69, %102, %135, %168 in 1 : vector<8x1xf32>, vector<8x1xf32>, vector<8x1xf32>, vector<8x1xf32> -> vector<8x4xf32>
    %c0_25 = arith.constant 0 : index
    %c0_26 = arith.constant 0 : index
    %171 = vector.load %arg10[%c0_25, %c0_26] : memref<8x4xf32, #tpu.memory_space<vmem>>, vector<8x4xf32>
    tpu.vector_store %arg10[%c0_25, %c0_26], %169 {strides = array<i32>} : memref<8x4xf32, #tpu.memory_space<vmem>>, vector<8x4xf32>,
    %172 = arith.mulf %170, %170 : vector<8x4xf32>
    %c0_27 = arith.constant 0 : index
    %c0_28 = arith.constant 0 : index
    %173 = vector.load %arg11[%c0_27, %c0_28] : memref<8x4xf32, #tpu.memory_space<vmem>>, vector<8x4xf32>
    tpu.vector_store %arg11[%c0_27, %c0_28], %172 {strides = array<i32>} : memref<8x4xf32, #tpu.memory_space<vmem>>, vector<8x4xf32>,
    return
  }
  func.func @transform_0(%arg0: i32) -> (i32, i32) {
    %c0_i32 = arith.constant 0 : i32
    %c0_i32_0 = arith.constant 0 : i32
    return %arg0, %c0_i32 : i32, i32
  }
  func.func @transform_1(%arg0: i32) -> (i32, i32) {
    %c0_i32 = arith.constant 0 : i32
    %c0_i32_0 = arith.constant 0 : i32
    return %arg0, %c0_i32 : i32, i32
  }
  func.func @transform_2(%arg0: i32) -> (i32, i32) {
    %c0_i32 = arith.constant 0 : i32
    %c0_i32_0 = arith.constant 0 : i32
    return %arg0, %c0_i32 : i32, i32
  }
  func.func @transform_3(%arg0: i32) -> (i32, i32) {
    %c0_i32 = arith.constant 0 : i32
    %c0_i32_0 = arith.constant 0 : i32
    %c0_i32_1 = arith.constant 0 : i32
    return %c0_i32, %c0_i32_0 : i32, i32
  }
  func.func @transform_4(%arg0: i32) -> (i32, i32) {
    %c0_i32 = arith.constant 0 : i32
    %c0_i32_0 = arith.constant 0 : i32
    %c0_i32_1 = arith.constant 0 : i32
    return %c0_i32, %c0_i32_0 : i32, i32
  }
  func.func @transform_5(%arg0: i32) -> (i32, i32) {
    %c0_i32 = arith.constant 0 : i32
    %c0_i32_0 = arith.constant 0 : i32
    %c0_i32_1 = arith.constant 0 : i32
    return %c0_i32, %c0_i32_0 : i32, i32
  }
  func.func @transform_6(%arg0: i32) -> (i32, i32) {
    %c0_i32 = arith.constant 0 : i32
    %c0_i32_0 = arith.constant 0 : i32
    %c0_i32_1 = arith.constant 0 : i32
    return %c0_i32, %c0_i32_0 : i32, i32
  }
  func.func @transform_7(%arg0: i32) -> (i32, i32) {
    %c0_i32 = arith.constant 0 : i32
    %c0_i32_0 = arith.constant 0 : i32
    %c0_i32_1 = arith.constant 0 : i32
    return %c0_i32, %c0_i32_0 : i32, i32
  }
  func.func @transform_8(%arg0: i32) -> (i32, i32) {
    %c0_i32 = arith.constant 0 : i32
    %c0_i32_0 = arith.constant 0 : i32
    %c0_i32_1 = arith.constant 0 : i32
    return %c0_i32, %c0_i32_0 : i32, i32
  }
  func.func @transform_9(%arg0: i32) -> (i32, i32) {
    %c0_i32 = arith.constant 0 : i32
    %c0_i32_0 = arith.constant 0 : i32
    return %arg0, %c0_i32 : i32, i32
  }
  func.func @transform_10(%arg0: i32) -> (i32, i32) {
    %c0_i32 = arith.constant 0 : i32
    %c0_i32_0 = arith.constant 0 : i32
    return %arg0, %c0_i32 : i32, i32
  }
}

</mosaic_0001>

<bundles_post_ra>
// kernel: tpu_custom_call.1
= control target key start
LH: loop header
LB: loop body
LE: loop exit
PB: predicated region body
PF: predicated region fallthrough
CT: control target
= control target key end

     0   :  { %16 = vsyncpa [#allocation3], 0  ;;  %s987_s0 = inlined_call_operand.hbm [shape: f32[2,32], index: 0, kind: input, shape index: {}]   ;;  %s988_s1 = inlined_call_operand.hbm [shape: f32[2,4], index: 1, kind: input, shape index: {}]   ;;  %s989_s2 = inlined_call_operand.hbm [shape: f32[2,16], index: 2, kind: input, shape index: {}]   ;;  %s990_s3 = inlined_call_operand.vmem [shape: bf16[32,32], index: 3, kind: input, shape index: {}]   ;;  %s991_s4 = inlined_call_operand.vmem [shape: f32[4,32], index: 4, kind: input, shape index: {}]   ;;  %s992_s5 = inlined_call_operand.vmem [shape: f32[4,32], index: 5, kind: input, shape index: {}]   ;;  %s993_s6 = inlined_call_operand.vmem [shape: f32[1,32], index: 6, kind: input, shape index: {}]   ;;  %s994_s7 = inlined_call_operand.vmem [shape: bf16[32,2], index: 7, kind: input, shape index: {}]   ;;  %s995_s8 = inlined_call_operand.vmem [shape: f32[1,2], index: 8, kind: input, shape index: {}]   ;;  %s996_s9 = inlined_call_operand.hbm [shape: f32[2,4], index: 9, kind: output, shape index: {0}]   ;;  %s997_s10 = inlined_call_operand.hbm [shape: f32[2,4], index: 10, kind: output, shape index: {1}]  }
   0x1   :  { %17 = vsyncpa [#allocation6], 0 }
   0x2   :  { %18 = vsyncpa [#allocation4], 0 }
   0x3   :  { %19 = vsyncpa [#allocation10], 0 }
   0x4   :  { %24 = vsyncadd [#allocation3], 96  ;;  %s808_s13 = smov [#allocation2]  }
   0x5   :  { %s25_s14 = sshll.u32 %s808_s13, 4  ;;  %s26_s14 = int_to_ptr.vmem [resolvable:$true] %s25_s14 }
   0x6   :  { %s708_s15 = scalar_lea.vmem %s26_s14, 32  ;;  %s712_s16 = scalar_lea.vmem %s26_s14, 128 }
   0x7   :  { %p709_p0 = scmp.ne.s32.totalorder %s26_s14, %s708_s15  ;;  %p713_p1 = scmp.lt.s32.totalorder %s26_s14, %s26_s14 }
   0x8   :  { %p714_p2 = scmp.lt.s32.totalorder %s712_s16, %s708_s15 }
   0xa   :  { %p715_p3 = por %p714_p2, %p713_p1 }
   0xc   :  { %p716_p4 = pnand %p715_p3, %p709_p0 }
   0xe   :  { %719 = shalt.err (!%p716_p4)
}
   0xf   :  { %s809_s17 = smov 32   ;;  %s810_s18 = smov 2  }
  0x10   :  { %31 = dma.hbm_to_vmem [thread:$0]  %s987_s0, 32, %s26_s14, [#allocation3], %s809_s17, %s809_s17, %s810_s18  }
  0x11   :  { %36 = vsyncadd [#allocation6], 96  ;;  %s811_s21 = smov [#allocation5]  }
  0x12   :  { %s37_s22 = sshll.u32 %s811_s21, 4  ;;  %s38_s22 = int_to_ptr.vmem [resolvable:$true] %s37_s22 }
  0x13   :  { %s728_s23 = scalar_lea.vmem %s38_s22, 32  ;;  %s732_s24 = scalar_lea.vmem %s38_s22, 128 }
  0x14   :  { %p729_p5 = scmp.ne.s32.totalorder %s38_s22, %s728_s23  ;;  %p733_p6 = scmp.lt.s32.totalorder %s38_s22, %s38_s22 }
  0x15   :  { %p734_p7 = scmp.lt.s32.totalorder %s732_s24, %s728_s23 }
  0x17   :  { %p735_p8 = por %p734_p7, %p733_p6 }
  0x19   :  { %p736_p9 = pnand %p735_p8, %p729_p5 }
  0x1b   :  { %739 = shalt.err (!%p736_p9)
}
  0x1c   :  { %43 = dma.hbm_to_vmem [thread:$0]  %s988_s1, 32, %s38_s22, [#allocation6], %s809_s17, %s809_s17, %s810_s18  }
  0x1d   :  { %48 = vsyncadd [#allocation6], 96  ;;  %s812_s0 = smov [#allocation7]  }
  0x1e   :  { %s49_s27 = sshll.u32 %s812_s0, 4  ;;  %s50_s27 = int_to_ptr.vmem [resolvable:$true] %s49_s27 }
  0x1f   :  { %s748_s28 = scalar_lea.vmem %s50_s27, 32  ;;  %s752_s29 = scalar_lea.vmem %s50_s27, 128 }
  0x20   :  { %p749_p10 = scmp.ne.s32.totalorder %s50_s27, %s748_s28  ;;  %p753_p11 = scmp.lt.s32.totalorder %s50_s27, %s50_s27 }
  0x21   :  { %p754_p12 = scmp.lt.s32.totalorder %s752_s29, %s748_s28 }
  0x23   :  { %p755_p13 = por %p754_p12, %p753_p11 }
  0x25   :  { %p756_p0 = pnand %p755_p13, %p749_p10 }
  0x27   :  { %759 = shalt.err (!%p756_p0)
}
  0x28   :  { %55 = dma.hbm_to_vmem [thread:$0]  %s989_s2, 32, %s50_s27, [#allocation6], %s809_s17, %s809_s17, %s810_s18  }
  0x29   :  { %800 = dma.done.wait [#allocation3], 128  }
  0x2a   :  { %801 = vsyncadd [#allocation3], 4294967168 }
  0x2b   :  { %802 = dma.done.wait [#allocation6], 256  }
  0x2c   :  { %803 = vsyncadd [#allocation6], 4294967040  ;;  %v813_v0 = vmov 0.0   ;;  %vm814_vm0 = vmmov 0   ;;  %v815_v1 = vmov 2   ;;  %v816_v2 = vmov 0  }
  0x2d   :  { %607 = vmatprep.subr.bf16.mxu0 %v813_v0  ;;  %611 = vmatprep.mubr.msk.bf16.mxu0 %vm814_vm0, %v813_v0  ;;  %v696_v3 = vld [vmem:[%s990_s3 + $0x8] sm:$0xff]   ;;  %v697_v4 = vld [vmem:[%s990_s3] sm:$0xff]   ;;  %vm108_vm1 = vcmask 261120   ;;  %v817_v8 = vmov 3   ;;  %v818_v9 = vmov 1   ;;  %v190_v10 = vld [vmem:[#allocation7] sm:$0xff]  ;;  %v91_v36 = vlaneseq }
  0x2e   :  { %677 = vset.pattern.permute.xlu1 %v815_v1  ;;  %675 = vset.pattern.permute.xlu0 %v816_v2  ;;  %v78_v5 = vld [vmem:[#allocation2] sm:$0xff]  ;;  %v84_v6 = vld [vmem:[#allocation5] sm:$0xff]  ;;  %v819_v11 = vmov 4   ;;  %v820_v12 = vmov 5   ;;  %v821_v13 = vmov 7   ;;  %v822_v14 = vmov 6  }
  0x2f   :  { %615 = vmatprep.subr.bf16.mxu1 %v813_v0  ;;  %619 = vmatprep.mubr.msk.bf16.mxu1 %vm814_vm0, %v813_v0  ;;  %v79_v7 = vpack.c.bf16 %v78_v5, %v78_v5  ;;  %v823_v15 = vmov 9   ;;  %v824_v16 = vmov 14   ;;  %v825_v17 = vmov 8   ;;  %v929_v23 = vld [vmem:[%s994_s7 + $0x8] sm:$0xff]   ;;  %v938_v24 = vld [vmem:[%s994_s7] sm:$0xff]   ;;  %s831_s23 = smov 127  }
  0x30   :  { %608 = vmatpush3.bf16.msra.mxu0 %v696_v3  ;;  %163 = vperm.xlu1 %677, %v84_v6   ;;  %v826_v18 = vmov 15   ;;  %v827_v19 = vmov 12   ;;  %v828_v20 = vmov 13   ;;  %v829_v21 = vmov 10   ;;  %v85_v41 = vld [vmem:[%s991_s4] sm:$0xf] }
  0x31   :  { %609 = vmatprep.subr.bf16.mxu0 %v813_v0  ;;  %88 = vperm.xlu0 %675, %v84_v6   ;;  %v830_v22 = vmov 11   ;;  %v92_v39 = vshrl.u32 %v91_v36, 7  ;;  %v191_v53 = vld [vmem:[%s992_s5] sm:$0xf]  ;;  %s832_s24 = smov 1   ;;  %vm524_vm2 = vcmask 7168  }
  0x32   :  { %616 = vmatpush3.bf16.msra.mxu1 %v929_v23  ;;  %v584_v3 = vld [vmem:[%s993_s6] ss:$0 sm:$0xff]  ;;  %vm526_vm3 = vcmask 15360   ;;  %vm528_vm4 = vcmask 23552   ;;  %vm543_vm5 = vcmask 31744  }
  0x33   :  { %617 = vmatprep.subr.bf16.mxu1 %v813_v0  ;;  %v93_v40 = vsub.s32 0, %v92_v39  ;;  %v168_v43 = vsub.s32 2, %v92_v39  ;;  %v158_v44 = vsub.s32 1, %v92_v39  ;;  %v178_v47 = vsub.s32 3, %v92_v39 }
  0x34   :  { %610 = vmatpush3.bf16.msra.mxu0 %v697_v4  ;;  %678 = vset.pattern.permute.xlu1 %v817_v8 }
  0x35   :  { %623 = vmatprep.subr.bf16.mxu0 %v813_v0  ;;  %173 = vperm.xlu1 %678, %v84_v6   ;;  %v94_v45 = vrot.slane %v85_v41, %v93_v40  ;;  %v159_v48 = vrot.slane %v85_v41, %v158_v44  ;;  %v169_v49 = vrot.slane %v85_v41, %v168_v43 }
  0x36   :  { %676 = vset.pattern.permute.xlu0 %v818_v9  ;;  %618 = vmatpush3.bf16.msra.mxu1 %v938_v24  ;;  %v179_v54 = vrot.slane %v85_v41, %v178_v47  ;;  %v205_v61 = vrot.slane %v191_v53, %v93_v40 }
  0x37   :  { %612 = vmatmul.mubr.msk.bf16.vlgmr.msra.gmra.mxu0 %vm108_vm1, %v79_v7  ;;  %153 = vperm.xlu0 %676, %v84_v6  }
  0x38   :  { %627 = vmatprep.mubr.msk.bf16.mxu0 %vm814_vm0, %v813_v0  ;;  %624 = vmatpush3.bf16.msra.mxu0 %v929_v23 }
  0x39   :  { %679 = vset.pattern.permute.xlu1 %v816_v2  ;;  %625 = vmatprep.subr.bf16.mxu0 %v813_v0  ;;  %v215_v2 = vrot.slane %v191_v53, %v158_v44 }
  0x3a   :  { %199 = vperm.xlu1 %679, %v190_v10   ;;  %631 = vmatprep.subr.bf16.mxu1 %v813_v0 }
  0x3b   :  { %680 = vset.pattern.permute.xlu0 %v819_v11 }
  0x3c   :  { %303 = vperm.xlu0 %680, %v190_v10   ;;  %626 = vmatpush3.bf16.msra.mxu0 %v938_v24 }
  0x3d   :  { %639 = vmatprep.subr.bf16.mxu0 %v813_v0 }
  0x3e   :  { %681 = vset.pattern.permute.xlu1 %v818_v9 }
  0x3f   :  { %209 = vperm.xlu1 %681, %v190_v10  }
  0x40   :  { %683 = vset.pattern.permute.xlu0 %v815_v1 }
  0x41   :  { %219 = vperm.xlu0 %683, %v190_v10  }
  0x43   :  { %682 = vset.pattern.permute.xlu1 %v820_v12 }
  0x44   :  { %309 = vperm.xlu1 %682, %v190_v10  }
  0x45   :  { %686 = vset.pattern.permute.xlu0 %v821_v13 }
  0x46   :  { %321 = vperm.xlu0 %686, %v190_v10  }
  0x48   :  { %684 = vset.pattern.permute.xlu1 %v822_v14 }
  0x49   :  { %315 = vperm.xlu1 %684, %v190_v10  }
  0x4a   :  { %689 = vset.pattern.permute.xlu0 %v823_v15 }
  0x4b   :  { %379 = vperm.xlu0 %689, %v190_v10  }
  0x4d   :  { %685 = vset.pattern.permute.xlu1 %v817_v8  ;;  %v225_v8 = vrot.slane %v191_v53, %v168_v43 }
  0x4e   :  { %229 = vperm.xlu1 %685, %v190_v10  }
  0x4f   :  { %692 = vset.pattern.permute.xlu0 %v824_v16  ;;  %v235_v16 = vrot.slane %v191_v53, %v178_v47 }
  0x50   :  { %455 = vperm.xlu0 %692, %v190_v10  }
  0x52   :  { %687 = vset.pattern.permute.xlu1 %v825_v17 }
  0x53   :  { %373 = vperm.xlu1 %687, %v190_v10  }
  0x54   :  { %695 = vset.pattern.permute.xlu0 %v826_v18 }
  0x57   :  { %688 = vset.pattern.permute.xlu1 %v827_v19 }
  0x58   :  { %443 = vperm.xlu1 %688, %v190_v10  }
  0x5c   :  { %690 = vset.pattern.permute.xlu1 %v828_v20 }
  0x5d   :  { %449 = vperm.xlu1 %690, %v190_v10  }
  0x61   :  { %691 = vset.pattern.permute.xlu1 %v829_v21 }
  0x62   :  { %385 = vperm.xlu1 %691, %v190_v10  }
  0x66   :  { %693 = vset.pattern.permute.xlu1 %v830_v22 }
  0x67   :  { %391 = vperm.xlu1 %693, %v190_v10  }
  0x6b   :  { %694 = vset.pattern.permute.xlu1 %v826_v18 }
  0x6c   :  { %461 = vperm.xlu1 %694, %v190_v10  }
  0xab   :  { %v164_v25 = vpop.permute.xlu1 %163 }
  0xac   :  { %v89_v31 = vpop.permute.xlu0 %88  ;;  %v170_v59 = vmul.f32 %v169_v49, %v164_v25 }
  0xad   :  { %v95_v50 = vmul.f32 %v94_v45, %v89_v31 }
  0xb0   :  { %v174_v26 = vpop.permute.xlu1 %173 }
  0xb1   :  { %v180_v63 = vmul.f32 %v179_v54, %v174_v26 }
  0xb2   :  { %v154_v33 = vpop.permute.xlu0 %153 }
  0xb3   :  { %v160_v55 = vmul.f32 %v159_v48, %v154_v33 }
  0xb5   :  { %v200_v27 = vpop.permute.xlu1 %199 }
  0xb6   :  { %v206_v9 = vmul.f32 %v205_v61, %v200_v27 }
  0xb7   :  { %v304_v35 = vpop.permute.xlu0 %303 }
  0xb8   :  { %v306_v10 = vmul.f32 %v304_v35, %v205_v61 }
  0xba   :  { %v210_v28 = vpop.permute.xlu1 %209 }
  0xbb   :  { %v216_v17 = vmul.f32 %v215_v2, %v210_v28 }
  0xbc   :  { %v220_v38 = vpop.permute.xlu0 %219 }
  0xbd   :  { %v226_v31 = vmul.f32 %v225_v8, %v220_v38 }
  0xbf   :  { %v310_v29 = vpop.permute.xlu1 %309 }
  0xc0   :  { %v312_v18 = vmul.f32 %v310_v29, %v215_v2 }
  0xc1   :  { %v322_v46 = vpop.permute.xlu0 %321 }
  0xc2   :  { %v324_v33 = vmul.f32 %v322_v46, %v235_v16 }
  0xc4   :  { %v316_v30 = vpop.permute.xlu1 %315 }
  0xc5   :  { %v318_v26 = vmul.f32 %v316_v30, %v225_v8 }
  0xc6   :  { %v380_v57 = vpop.permute.xlu0 %379 }
  0xc7   :  { %v382_v11 = vmul.f32 %v380_v57, %v215_v2 }
  0xc9   :  { %v944_v32 = vpop.permute.xlu1 %229 }
  0xcb   :  { %v456_v7 = vpop.permute.xlu0 %455 }
  0xcc   :  { %v458_v19 = vmul.f32 %v456_v7, %v225_v8 }
  0xce   :  { %v374_v34 = vpop.permute.xlu1 %373 }
  0xcf   :  { %v376_v12 = vmul.f32 %v374_v34, %v205_v61 }
  0xd3   :  { %v444_v37 = vpop.permute.xlu1 %443 }
  0xd4   :  { %v446_v13 = vmul.f32 %v444_v37, %v205_v61  ;;  %v236_v37 = vmul.f32 %v235_v16, %v944_v32 }
  0xd8   :  { %v450_v42 = vpop.permute.xlu1 %449 }
  0xd9   :  { %v452_v15 = vmul.f32 %v450_v42, %v215_v2 }
  0xdd   :  { %v386_v52 = vpop.permute.xlu1 %385 }
  0xde   :  { %v388_v36 = vmul.f32 %v386_v52, %v225_v8 }
  0xe2   :  { %v392_v5 = vpop.permute.xlu1 %391 }
  0xe3   :  { %v394_v44 = vmul.f32 %v392_v5, %v235_v16 }
  0xe7   :  { %v462_v39 = vpop.permute.xlu1 %461 }
  0xe8   :  { %v464_v28 = vmul.f32 %v462_v39, %v235_v16 }
  0xf7   :  { %v146_v51 = vpop.f32.mrf.mxu0 }
  0xf8   :  { %v147_v56 = vadd.f32 %v146_v51, %v95_v50 }
  0xf9   :  { %v613_v58 = vpop.f32.mrf.mxu0 }
  0xfa   :  { %v161_v60 = vadd.f32 %v160_v55, %v147_v56 }
  0xfb   :  { %v149_v62 = vpop.f32.mrf.mxu0 }
  0xfc   :  { %v171_v1 = vadd.f32 %v170_v59, %v161_v60 }
  0xfd   :  { %v614_v4 = vpop.f32.mrf.mxu0 }
  0xfe   :  { %v181_v6 = vadd.f32 %v180_v63, %v171_v1 }
 0x100   :  { %v189_v14 = vadd.f32 %v584_v3, %v181_v6 }
 0x102   :  { %v447_v20 = vadd.f32 %v446_v13, %v189_v14  ;;  %v307_v21 = vadd.f32 %v306_v10, %v189_v14  ;;  %v377_v22 = vadd.f32 %v376_v12, %v189_v14  ;;  %v207_v25 = vadd.f32 %v206_v9, %v189_v14 }
 0x104   :  { %v453_v27 = vadd.f32 %v452_v15, %v447_v20  ;;  %v313_v35 = vadd.f32 %v312_v18, %v307_v21  ;;  %v383_v40 = vadd.f32 %v382_v11, %v377_v22  ;;  %v217_v34 = vadd.f32 %v216_v17, %v207_v25 }
 0x106   :  { %v319_v41 = vadd.f32 %v318_v26, %v313_v35  ;;  %v459_v42 = vadd.f32 %v458_v19, %v453_v27  ;;  %v227_v29 = vadd.f32 %v226_v31, %v217_v34  ;;  %v389_v43 = vadd.f32 %v388_v36, %v383_v40 }
 0x108   :  { %v325_v45 = vadd.f32 %v324_v33, %v319_v41  ;;  %v237_v47 = vadd.f32 %v236_v37, %v227_v29  ;;  %v465_v30 = vadd.f32 %v464_v28, %v459_v42  ;;  %v395_v38 = vadd.f32 %v394_v44, %v389_v43 }
 0x10a   :  { %v326_v48 = vmul.f32 0.01, %v325_v45  ;;  %v238_v46 = vmul.f32 0.01, %v237_v47  ;;  %v466_v52 = vmul.f32 0.01, %v465_v30 }
 0x10b   :  { %v396_v53 = vmul.f32 0.01, %v395_v38 }
 0x10c   :  { %v327_v49 = vmax.f32 %v325_v45, %v326_v48  ;;  %v239_v50 = vmax.f32 %v237_v47, %v238_v46  ;;  %v467_v32 = vmax.f32 %v465_v30, %v466_v52 }
 0x10d   :  { %v397_v55 = vmax.f32 %v395_v38, %v396_v53 }
 0x10e   :  { %v328_v51 = vpack.c.bf16 %v327_v49, %v327_v49  ;;  %v240_v54 = vpack.c.bf16 %v239_v50, %v239_v50  ;;  %v468_v56 = vpack.c.bf16 %v467_v32, %v467_v32 }
 0x10f   :  { %v398_v57 = vpack.c.bf16 %v397_v55, %v397_v55 }
 0x110   :  { %628 = vmatmul.mubr.msk.bf16.vlgmr.msra.gmra.mxu0 %vm108_vm1, %v328_v51  ;;  %620 = vmatmul.mubr.msk.bf16.vlgmr.msra.gmra.mxu1 %vm108_vm1, %v240_v54 }
 0x111   :  { %640 = vmatpush3.bf16.msra.mxu0 %v929_v23  ;;  %632 = vmatpush3.bf16.msra.mxu1 %v929_v23  ;;  %v585_v23 = vld [vmem:[%s995_s8] ss:$0 sm:$0xff]  ;;  %s833_s8 = smov 3  }
 0x112   :  { %641 = vmatprep.subr.bf16.mxu0 %v813_v0  ;;  %633 = vmatprep.subr.bf16.mxu1 %v813_v0 }
 0x113   :  { %635 = vmatprep.mubr.msk.bf16.mxu1 %vm814_vm0, %v813_v0  ;;  %643 = vmatprep.mubr.msk.bf16.mxu0 %vm814_vm0, %v813_v0 }
 0x115   :  { %642 = vmatpush3.bf16.msra.mxu0 %v938_v24  ;;  %634 = vmatpush3.bf16.msra.mxu1 %v938_v24 }
 0x118   :  { %644 = vmatmul.mubr.msk.bf16.vlgmr.msra.gmra.mxu0 %vm108_vm1, %v468_v56  ;;  %636 = vmatmul.mubr.msk.bf16.vlgmr.msra.gmra.mxu1 %vm108_vm1, %v398_v57 }
 0x1d0   :  { %v366_v58 = vpop.f32.mrf.mxu0  ;;  %v296_v59 = vpop.f32.mrf.mxu1 }
 0x1d1   :  { %v297_v60 = vadd.f32 %v585_v23, %v296_v59  ;;  %v367_v1 = vadd.f32 %v585_v23, %v366_v58 }
 0x1d2   :  { %v629_v61 = vpop.f32.mrf.mxu0  ;;  %v621_v62 = vpop.f32.mrf.mxu1 }
 0x1d3   :  { %531 = vrot.lane.b32.xlu0 %v297_v60, %s831_s23 }
 0x1d4   :  { %v369_v0 = vpop.f32.mrf.mxu0  ;;  %v299_v63 = vpop.f32.mrf.mxu1 }
 0x1d6   :  { %v630_v24 = vpop.f32.mrf.mxu0  ;;  %v622_v2 = vpop.f32.mrf.mxu1 }
 0x1d7   :  { %513 = vrot.lane.b32.xlu0 %v367_v1, %s832_s24 }
 0x1d8   :  { %v506_v3 = vpop.f32.mrf.mxu0  ;;  %v436_v4 = vpop.f32.mrf.mxu1 }
 0x1d9   :  { %v437_v5 = vadd.f32 %v585_v23, %v436_v4  ;;  %v507_v10 = vadd.f32 %v585_v23, %v506_v3 }
 0x1da   :  { %v645_v6 = vpop.f32.mrf.mxu0  ;;  %v637_v7 = vpop.f32.mrf.mxu1 }
 0x1db   :  { %534 = vrot.lane.b32.xlu1 %v437_v5, %s832_s24  ;;  %517 = vrot.lane.b32.xlu0 %v437_v5, %s810_s18 }
 0x1dc   :  { %v509_v8 = vpop.f32.mrf.mxu0  ;;  %v439_v9 = vpop.f32.mrf.mxu1 }
 0x1de   :  { %v646_v11 = vpop.f32.mrf.mxu0  ;;  %v638_v12 = vpop.f32.mrf.mxu1 }
 0x1df   :  { %537 = vrot.lane.b32.xlu1 %v507_v10, %s810_s18 }
 0x1e3   :  { %521 = vrot.lane.b32.xlu1 %v507_v10, %s833_s8 }
 0x245   :  { %v532_v13 = vpop.permute.xlu0 %531 }
 0x246   :  { %v540_v16 = vsel %vm524_vm2, %v532_v13, %v367_v1 }
 0x249   :  { %v514_v14 = vpop.permute.xlu0 %513 }
 0x24a   :  { %v525_v22 = vsel %vm524_vm2, %v297_v60, %v514_v14 }
 0x24d   :  { %v535_v15 = vpop.permute.xlu1 %534  ;;  %v518_v19 = vpop.permute.xlu0 %517 }
 0x24e   :  { %v541_v17 = vsel %vm526_vm3, %v540_v16, %v535_v15  ;;  %v527_v25 = vsel %vm526_vm3, %v525_v22, %v518_v19 }
 0x251   :  { %v538_v18 = vpop.permute.xlu1 %537 }
 0x252   :  { %v542_v20 = vsel %vm528_vm4, %v541_v17, %v538_v18 }
 0x253   :  { %v545_v21 = vmul.f32 %v542_v20, %v542_v20 }
 0x255   :  { %546 = vst.msk [vmem:[#allocation9] sm:$0xff] %vm543_vm5, %v545_v21  ;;  %v522_v26 = vpop.permute.xlu1 %521 }
 0x256   :  { %v529_v31 = vsel %vm528_vm4, %v527_v25, %v522_v26 }
 0x257   :  { %544 = vst.msk [vmem:[#allocation8] sm:$0xff] %vm543_vm5, %v529_v31 }
 0x258   :  { %551 = vsyncadd [#allocation4], 96  ;;  %s834_s25 = smov [#allocation8]  }
 0x259   :  { %s552_s26 = sshll.u32 %s834_s25, 4  ;;  %s553_s26 = int_to_ptr.vmem [resolvable:$true] %s552_s26 }
 0x25a   :  { %s760_s0 = scalar_lea.vmem %s553_s26, 32  ;;  %s764_s27 = scalar_lea.vmem %s553_s26, 128 }
 0x25b   :  { %p761_p1 = scmp.ne.s32.totalorder %s553_s26, %s760_s0  ;;  %p765_p2 = scmp.lt.s32.totalorder %s553_s26, %s553_s26 }
 0x25c   :  { %p766_p3 = scmp.lt.s32.totalorder %s764_s27, %s760_s0 }
 0x25e   :  { %p767_p4 = por %p766_p3, %p765_p2 }
 0x260   :  { %p768_p5 = pnand %p767_p4, %p761_p1 }
 0x262   :  { %771 = shalt.err (!%p768_p5)
}
 0x263   :  { %558 = dma.vmem_to_hbm [thread:$0]  %s553_s26, 32, %s996_s9, [#allocation4], %s809_s17, %s809_s17, %s810_s18  }
 0x264   :  { %563 = vsyncadd [#allocation10], 96  ;;  %s835_s30 = smov [#allocation9]  }
 0x265   :  { %s564_s11 = sshll.u32 %s835_s30, 4  ;;  %s565_s11 = int_to_ptr.vmem [resolvable:$true] %s564_s11 }
 0x266   :  { %s780_s1 = scalar_lea.vmem %s565_s11, 32  ;;  %s784_s2 = scalar_lea.vmem %s565_s11, 128 }
 0x267   :  { %p781_p6 = scmp.ne.s32.totalorder %s565_s11, %s780_s1  ;;  %p785_p7 = scmp.lt.s32.totalorder %s565_s11, %s565_s11 }
 0x268   :  { %p786_p8 = scmp.lt.s32.totalorder %s784_s2, %s780_s1 }
 0x26a   :  { %p787_p9 = por %p786_p8, %p785_p7 }
 0x26c   :  { %p788_p10 = pnand %p787_p9, %p781_p6 }
 0x26e   :  { %791 = shalt.err (!%p788_p10)
}
 0x26f   :  { %570 = dma.vmem_to_hbm [thread:$0]  %s565_s11, 32, %s997_s10, [#allocation10], %s809_s17, %s809_s17, %s810_s18  }
 0x270   :  { %804 = dma.done.wait [#allocation4], 128  }
 0x271   :  { %805 = vsyncadd [#allocation4], 4294967168 }
 0x272   :  { %806 = dma.done.wait [#allocation10], 128  }
 0x273   :  { %807 = vsyncadd [#allocation10], 4294967168 }
 0x274   :  { %577 = vsyncpa [#allocation3], 1 }
 0x275   :  { %578 = vsyncpa [#allocation6], 1 }
 0x276   :  { %579 = vsyncpa [#allocation4], 1 }
 0x277   :  { %580 = vsyncpa [#allocation10], 1 }

</bundles_post_ra>
